<compile_context>
chip_gen: v6e
topology: v6e:2x2x1
jax: 0.10.0
libtpu: 0.0.40
codegen_flags: <defaults>
</compile_context>

<pallas_src>
import jax
import jax.numpy as jnp
from jax.experimental import pallas as pl
from jax.experimental.pallas import tpu as pltpu


# ----------------------------- fused single-pass kernel -----------------------------

def _fused_kernel(x_ref, w1t_ref, w2t_ref, o_ref):
    # x_ref/o_ref: (bt, C, HW)   w1t_ref: (C, Cr)   w2t_ref: (Cr, C)
    xv = x_ref[...]
    bt, _, hw = xv.shape

    # Adaptive avg / max pool over the spatial (lane) axis; accumulate in f32
    # without materializing a block-sized f32 copy.
    avg = jnp.sum(xv, axis=2, dtype=jnp.float32) * (1.0 / float(hw))     # (bt, C)
    mx = jnp.max(xv, axis=2).astype(jnp.float32)                          # (bt, C)
    pooled = jnp.concatenate([avg, mx], axis=0)                           # (2*bt, C)

    # fc: Conv2d(C, Cr, 1, bias=False) -> ReLU -> Conv2d(Cr, C, 1, bias=False),
    # batched across both pooled branches of every image in the block.
    h = jnp.maximum(
        jnp.dot(pooled, w1t_ref[...], preferred_element_type=jnp.float32), 0.0)
    o = jnp.dot(h, w2t_ref[...], preferred_element_type=jnp.float32)      # (2*bt, C)

    att = jax.nn.sigmoid(o[:bt, :] + o[bt:, :])                           # (bt, C)

    # Scale x in its native dtype; broadcast att over the HW lane axis.
    o_ref[...] = (xv * att.astype(xv.dtype)[:, :, None]).astype(o_ref.dtype)


# ----------------------------- two-pass (HW-tiled) kernels -----------------------------

def _make_pool_att_kernel(hw_total, hw_chunk, need_mask):
    def kernel(x_ref, w1t_ref, w2t_ref, att_ref, sum_sc, max_sc):
        h_idx = pl.program_id(1)

        @pl.when(h_idx == 0)
        def _():
            sum_sc[...] = jnp.zeros_like(sum_sc)
            max_sc[...] = jnp.full_like(max_sc, -jnp.inf)

        xv = x_ref[...]                                  # (1, C, hw_chunk)
        if need_mask:
            pos = jax.lax.broadcasted_iota(jnp.int32, xv.shape, 2) + h_idx * hw_chunk
            valid = pos < hw_total
            xs = jnp.where(valid, xv, jnp.zeros_like(xv))
            xm = jnp.where(valid, xv, jnp.full_like(xv, -jnp.inf))
        else:
            xs = xv
            xm = xv

        sum_sc[...] += jnp.sum(xs, axis=2, dtype=jnp.float32)
        max_sc[...] = jnp.maximum(max_sc[...], jnp.max(xm, axis=2).astype(jnp.float32))

        @pl.when(h_idx == pl.num_programs(1) - 1)
        def _():
            bt = sum_sc.shape[0]
            avg = sum_sc[...] * (1.0 / float(hw_total))                   # (bt, C)
            pooled = jnp.concatenate([avg, max_sc[...]], axis=0)          # (2*bt, C)
            hid = jnp.maximum(
                jnp.dot(pooled, w1t_ref[...], preferred_element_type=jnp.float32), 0.0)
            o = jnp.dot(hid, w2t_ref[...], preferred_element_type=jnp.float32)
            att = jax.nn.sigmoid(o[:bt, :] + o[bt:, :])                   # (bt, C)
            att_ref[...] = att[:, :, None].astype(att_ref.dtype)          # (bt, C, 1)

    return kernel


def _scale_kernel(x_ref, att_ref, o_ref):
    # x_ref/o_ref: (1, C, hw_chunk)   att_ref: (1, C, 1)
    xv = x_ref[...]
    o_ref[...] = (xv * att_ref[...].astype(xv.dtype)).astype(o_ref.dtype)


# ----------------------------- wrapper -----------------------------

def channel_attention(x_nchw, w1, w2, *, block_bytes_target=None):
    """x_nchw: (B, C, H, W). w1: (C//r, C). w2: (C, C//r). Returns (B, C, H, W)."""
    B, C, H, W = x_nchw.shape
    HW = H * W
    Cr = w1.shape[0]
    itemsize = x_nchw.dtype.itemsize

    x = x_nchw.reshape(B, C, HW)          # free contiguous reshape (no transpose)
    w1_t = jnp.transpose(w1)              # (C, Cr), tiny
    w2_t = jnp.transpose(w2)              # (Cr, C), tiny

    try:
        vmem_cap = int(pltpu.get_tpu_info().vmem_capacity_bytes)
    except Exception:
        vmem_cap = 64 << 20               # conservative (v7x) fallback
    if block_bytes_target is None:
        # ~15% of VMEM per block: double-buffered in+out blocks plus headroom
        # stay under ~75% of VMEM.  ~9.6 MiB on v7x, ~19 MiB on v5e/v6e.
        block_bytes_target = max(1 << 20, int(0.15 * vmem_cap))

    bytes_per_image = C * HW * itemsize

    if bytes_per_image <= block_bytes_target:
        # -------- single-pass fused path --------
        bt = max(1, min(B, block_bytes_target // bytes_per_image))
        nb = pl.cdiv(B, bt)               # ragged last block: OOB read-pad / write-drop
        block_bytes = bt * bytes_per_image
        vmem_limit = int(min(int(0.9 * vmem_cap),
                             max(32 << 20, 5 * block_bytes + (2 << 20))))

        out = pl.pallas_call(
            _fused_kernel,
            out_shape=jax.ShapeDtypeStruct((B, C, HW), x_nchw.dtype),
            grid_spec=pltpu.PrefetchScalarGridSpec(
                num_scalar_prefetch=0,
                grid=(nb,),
                in_specs=[
                    pl.BlockSpec((bt, C, HW), lambda b: (b, 0, 0)),
                    pl.BlockSpec((C, Cr), lambda b: (0, 0)),
                    pl.BlockSpec((Cr, C), lambda b: (0, 0)),
                ],
                out_specs=pl.BlockSpec((bt, C, HW), lambda b: (b, 0, 0)),
            ),
            compiler_params=pltpu.CompilerParams(
                dimension_semantics=("parallel",),
                vmem_limit_bytes=vmem_limit),
            cost_estimate=pl.CostEstimate(
                flops=8 * B * C * Cr + 4 * B * C * HW,
                transcendentals=2 * B * C,
                bytes_accessed=2 * B * bytes_per_image),
        )(x, w1_t, w2_t)
        return out.reshape(B, C, H, W)

    # -------- two-pass HW-tiled path (single image exceeds the VMEM block budget) --------
    hw_chunk = max(128, (block_bytes_target // (C * itemsize)) // 128 * 128)
    hw_chunk = min(hw_chunk, HW)
    n_hw = pl.cdiv(HW, hw_chunk)
    need_mask = (HW % hw_chunk) != 0
    chunk_bytes = C * hw_chunk * itemsize
    vmem_limit = int(min(int(0.9 * vmem_cap),
                         max(32 << 20, 5 * chunk_bytes + (2 << 20))))

    # Pass 1: chunked sum/max over HW (accumulated in scratch), then fc + sigmoid.
    att = pl.pallas_call(
        _make_pool_att_kernel(HW, hw_chunk, need_mask),
        out_shape=jax.ShapeDtypeStruct((B, C, 1), jnp.float32),
        grid_spec=pltpu.PrefetchScalarGridSpec(
            num_scalar_prefetch=0,
            grid=(B, n_hw),
            in_specs=[
                pl.BlockSpec((1, C, hw_chunk), lambda b, h: (b, 0, h)),
                pl.BlockSpec((C, Cr), lambda b, h: (0, 0)),
                pl.BlockSpec((Cr, C), lambda b, h: (0, 0)),
            ],
            out_specs=pl.BlockSpec((1, C, 1), lambda b, h: (b, 0, 0)),
            scratch_shapes=[pltpu.VMEM((1, C), jnp.float32),
                            pltpu.VMEM((1, C), jnp.float32)],
        ),
        compiler_params=pltpu.CompilerParams(
            dimension_semantics=("parallel", "arbitrary"),
            vmem_limit_bytes=vmem_limit),
        cost_estimate=pl.CostEstimate(
            flops=8 * B * C * Cr + 2 * B * C * HW,
            transcendentals=2 * B * C,
            bytes_accessed=B * bytes_per_image),
    )(x, w1_t, w2_t)

    # Pass 2: stream x again and scale; both axes parallel (spans both v7x TCs).
    out = pl.pallas_call(
        _scale_kernel,
        out_shape=jax.ShapeDtypeStruct((B, C, HW), x_nchw.dtype),
        grid_spec=pltpu.PrefetchScalarGridSpec(
            num_scalar_prefetch=0,
            grid=(B, n_hw),
            in_specs=[
                pl.BlockSpec((1, C, hw_chunk), lambda b, h: (b, 0, h)),
                pl.BlockSpec((1, C, 1), lambda b, h: (b, 0, 0)),
            ],
            out_specs=pl.BlockSpec((1, C, hw_chunk), lambda b, h: (b, 0, h)),
        ),
        compiler_params=pltpu.CompilerParams(
            dimension_semantics=("parallel", "parallel"),
            vmem_limit_bytes=vmem_limit),
        cost_estimate=pl.CostEstimate(
            flops=B * C * HW,
            transcendentals=0,
            bytes_accessed=2 * B * bytes_per_image),
    )(x, att)
    return out.reshape(B, C, H, W)


# ----------------------------- pure-JAX reference -----------------------------

def reference_channel_attention(x, w1, w2):
    avg = jnp.mean(x, axis=(2, 3), keepdims=True)       # (B, C, 1, 1)
    mx = jnp.max(x, axis=(2, 3), keepdims=True)         # (B, C, 1, 1)

    def fc(p):                                          # p: (B, C, 1, 1)
        v = p[:, :, 0, 0]                               # (B, C)
        h = jnp.maximum(v @ w1.T, 0.0)                  # (B, Cr)
        return (h @ w2.T)[:, :, None, None]             # (B, C, 1, 1)

    out = fc(avg) + fc(mx)
    return jax.nn.sigmoid(out) * x


if __name__ == "__main__":
    # Small shapes consistent with the module defaults (reduction=16).
    B, C, H, W = 2, 64, 16, 16
    reduction = 16
    Cr = C // reduction                                 # 4

    key = jax.random.PRNGKey(0)
    kx, k1, k2, kx2 = jax.random.split(key, 4)

    x = jax.random.normal(kx, (B, C, H, W), dtype=jnp.float32)
    # Deterministic kaiming-uniform-ish init (bound = 1/sqrt(fan_in)), like
    # PyTorch Conv2d with 1x1 kernels and bias=False.
    w1 = jax.random.uniform(k1, (Cr, C), jnp.float32,
                            minval=-1.0, maxval=1.0) / jnp.sqrt(C)
    w2 = jax.random.uniform(k2, (C, Cr), jnp.float32,
                            minval=-1.0, maxval=1.0) / jnp.sqrt(Cr)

    # Main test: single-pass fused path (NCHW-native, no transposes).
    out = jax.block_until_ready(channel_attention(x, w1, w2))
    ref = reference_channel_attention(x, w1, w2)
    assert out.shape == (B, C, H, W)
    assert jnp.allclose(out, ref, atol=1e-5, rtol=1e-5), "mismatch vs reference (fused)"

    # Also exercise the HW-tiled two-pass path (forced via a tiny block target),
    # including a ragged last HW chunk (30*30 = 900 is not a multiple of 128).
    x2 = jax.random.normal(kx2, (B, C, 30, 30), dtype=jnp.float32)
    out2 = jax.block_until_ready(
        channel_attention(x2, w1, w2, block_bytes_target=128 * 1024))
    ref2 = reference_channel_attention(x2, w1, w2)
    assert jnp.allclose(out2, ref2, atol=1e-5, rtol=1e-5), "mismatch vs reference (two-pass)"

    print("KERNEL_OK")
</pallas_src>

<mosaic_0001>
module attributes {stable_mosaic.version = 11 : i64} {
  func.func @_fused_kernel(%arg0: i32, %arg1: memref<2x64x256xf32, #tpu.memory_space<vmem>>, %arg2: memref<64x4xf32, #tpu.memory_space<vmem>>, %arg3: memref<4x64xf32, #tpu.memory_space<vmem>>, %arg4: memref<2x64x256xf32, #tpu.memory_space<vmem>>) attributes {dimension_semantics = [#tpu.dimension_semantics<parallel>], iteration_bounds = array<i64: 1>, scalar_prefetch = 0 : i64, scratch_operands = 0 : i64, tpu.core_type = #tpu.core_type<tc>, window_params = [{transform_indices = @transform_0, window_bounds = array<i64: 2, 64, 256>}, {pipeline_mode = #tpu.pipeline_mode<synchronous>, transform_indices = @transform_1, window_bounds = array<i64: 64, 4>}, {pipeline_mode = #tpu.pipeline_mode<synchronous>, transform_indices = @transform_2, window_bounds = array<i64: 4, 64>}, {transform_indices = @transform_3, window_bounds = array<i64: 2, 64, 256>}]} {
    %c0 = arith.constant 0 : index
    %c0_0 = arith.constant 0 : index
    %c0_1 = arith.constant 0 : index
    %0 = vector.load %arg1[%c0, %c0_0, %c0_1] : memref<2x64x256xf32, #tpu.memory_space<vmem>>, vector<2x64x256xf32>
    %cst = arith.constant dense<0.000000e+00> : vector<2x64xf32>
    %1 = vector.multi_reduction <add>, %0, %cst [2] : vector<2x64x256xf32> to vector<2x64xf32>
    %cst_2 = arith.constant 3.906250e-03 : f32
    %2 = vector.broadcast %cst_2 : f32 to vector<2x64xf32>
    %3 = arith.mulf %1, %2 : vector<2x64xf32>
    %cst_3 = arith.constant dense<0xFF800000> : vector<2x64xf32>
    %4 = vector.multi_reduction <maximumf>, %0, %cst_3 [2] : vector<2x64x256xf32> to vector<2x64xf32>
    %5 = tpu.concatenate %3, %4 in 0 : vector<2x64xf32>, vector<2x64xf32> -> vector<4x64xf32>
    %c0_4 = arith.constant 0 : index
    %c0_5 = arith.constant 0 : index
    %6 = vector.load %arg2[%c0_4, %c0_5] : memref<64x4xf32, #tpu.memory_space<vmem>>, vector<64x4xf32>
    %cst_6 = arith.constant dense<0.000000e+00> : vector<4x4xf32>
    %7 = tpu.matmul %5, %6, %cst_6 {dimension_numbers = #tpu.dot_dimension_numbers<[1], [0], [0], [1], [0, 0, 1, 1], [], []>} : vector<4x64xf32>, vector<64x4xf32>, vector<4x4xf32> -> vector<4x4xf32>
    %cst_7 = arith.constant 0.000000e+00 : f32
    %8 = vector.broadcast %cst_7 : f32 to vector<4x4xf32>
    %9 = arith.maximumf %7, %8 : vector<4x4xf32>
    %c0_8 = arith.constant 0 : index
    %c0_9 = arith.constant 0 : index
    %10 = vector.load %arg3[%c0_8, %c0_9] : memref<4x64xf32, #tpu.memory_space<vmem>>, vector<4x64xf32>
    %cst_10 = arith.constant dense<0.000000e+00> : vector<4x64xf32>
    %11 = tpu.matmul %9, %10, %cst_10 {dimension_numbers = #tpu.dot_dimension_numbers<[1], [0], [0], [1], [0, 0, 1, 1], [], []>} : vector<4x4xf32>, vector<4x64xf32>, vector<4x64xf32> -> vector<4x64xf32>
    %12 = vector.extract_strided_slice %11 {offsets = [0, 0], sizes = [2, 64], strides = [1, 1]} : vector<4x64xf32> to vector<2x64xf32>
    %13 = vector.extract_strided_slice %11 {offsets = [2, 0], sizes = [2, 64], strides = [1, 1]} : vector<4x64xf32> to vector<2x64xf32>
    %14 = arith.addf %12, %13 : vector<2x64xf32>
    %15 = arith.negf %14 : vector<2x64xf32>
    %16 = math.exp %15 : vector<2x64xf32>
    %cst_11 = arith.constant 1.000000e+00 : f32
    %17 = vector.broadcast %cst_11 : f32 to vector<2x64xf32>
    %18 = arith.addf %17, %16 : vector<2x64xf32>
    %19 = arith.divf %17, %18 : vector<2x64xf32>
    %20 = vector.shape_cast %19 : vector<2x64xf32> to vector<2x64x1xf32>
    %21 = vector.broadcast %20 : vector<2x64x1xf32> to vector<2x64x256xf32>
    %22 = arith.mulf %0, %21 : vector<2x64x256xf32>
    %c0_12 = arith.constant 0 : index
    %c0_13 = arith.constant 0 : index
    %c0_14 = arith.constant 0 : index
    %23 = vector.load %arg4[%c0_12, %c0_13, %c0_14] : memref<2x64x256xf32, #tpu.memory_space<vmem>>, vector<2x64x256xf32>
    tpu.vector_store %arg4[%c0_12, %c0_13, %c0_14], %22 {strides = array<i32>} : memref<2x64x256xf32, #tpu.memory_space<vmem>>, vector<2x64x256xf32>,
    return
  }
  func.func @transform_0(%arg0: i32) -> (i32, i32, i32) {
    %c0_i32 = arith.constant 0 : i32
    %c0_i32_0 = arith.constant 0 : i32
    %c0_i32_1 = arith.constant 0 : i32
    return %arg0, %c0_i32, %c0_i32_0 : i32, i32, i32
  }
  func.func @transform_1(%arg0: i32) -> (i32, i32) {
    %c0_i32 = arith.constant 0 : i32
    %c0_i32_0 = arith.constant 0 : i32
    %c0_i32_1 = arith.constant 0 : i32
    return %c0_i32, %c0_i32_0 : i32, i32
  }
  func.func @transform_2(%arg0: i32) -> (i32, i32) {
    %c0_i32 = arith.constant 0 : i32
    %c0_i32_0 = arith.constant 0 : i32
    %c0_i32_1 = arith.constant 0 : i32
    return %c0_i32, %c0_i32_0 : i32, i32
  }
  func.func @transform_3(%arg0: i32) -> (i32, i32, i32) {
    %c0_i32 = arith.constant 0 : i32
    %c0_i32_0 = arith.constant 0 : i32
    %c0_i32_1 = arith.constant 0 : i32
    return %arg0, %c0_i32, %c0_i32_0 : i32, i32, i32
  }
}

</mosaic_0001>

<bundles_post_ra>
// kernel: tpu_custom_call.1
= control target key start
LH: loop header
LB: loop body
LE: loop exit
PB: predicated region body
PF: predicated region fallthrough
CT: control target
= control target key end

     0   :  { %8 = vsyncpa [#allocation3], 0  ;;  %s1146_s0 = inlined_call_operand.hbm [shape: f32[2,64,256], index: 0, kind: input, shape index: {}]   ;;  %s1147_s1 = inlined_call_operand.vmem [shape: f32[64,4], index: 1, kind: input, shape index: {}]   ;;  %s1148_s2 = inlined_call_operand.vmem [shape: f32[4,64], index: 2, kind: input, shape index: {}]   ;;  %s1149_s3 = inlined_call_operand.hbm [shape: f32[2,64,256], index: 3, kind: output, shape index: {}]  }
   0x1   :  { %9 = vsyncpa [#allocation4], 0  ;;  %s801_s12 = smov [#allocation2]  }
   0x2   :  { %s15_s13 = sshll.u32 %s801_s12, 4  ;;  %s16_s13 = int_to_ptr.vmem [resolvable:$true] %s15_s13 }
   0x3   :  { %s765_s14 = scalar_lea.vmem %s16_s13, 4096  ;;  %p770_p1 = scmp.lt.s32.totalorder %s16_s13, %s16_s13 }
   0x4   :  { %p766_p0 = scmp.ne.s32.totalorder %s16_s13, %s765_s14  ;;  %p771_p2 = scmp.lt.s32.totalorder %s765_s14, %s765_s14 }
   0x6   :  { %p772_p3 = por %p771_p2, %p770_p1 }
   0x8   :  { %p773_p4 = pnand %p772_p3, %p766_p0 }
   0xa   :  { %776 = shalt.err (!%p773_p4)
}
   0xb   :  { %s802_s15 = smov 256   ;;  %s803_s16 = smov 16  }
   0xc   :  { %21 = dma.hbm_to_vmem [thread:$0]  %s1146_s0, 4096, %s16_s13, [#allocation3], %s802_s15, %s802_s15, %s803_s16  }
   0xd   :  { %797 = dma.done.wait [#allocation3], 4096  }
   0xe   :  { %798 = vsyncadd [#allocation3], 4294963200  ;;  %v833_v0 = vld [vmem:[#allocation2 + $0x80] sm:$0xff]  ;;  %v835_v1 = vld [vmem:[#allocation2 + $0x88] sm:$0xff]  ;;  %vm805_vm0 = vmmov 0   ;;  %vm200_vm1 = vcmask 130112  }
   0xf   :  { %v837_v2 = vld [vmem:[#allocation2] sm:$0xff]  ;;  %v85_v3 = vadd.f32 %v835_v1, %v833_v0  ;;  %v841_v4 = vld [vmem:[#allocation2 + $0x8] sm:$0xff]  ;;  %v843_v5 = vld [vmem:[#allocation2 + $0x90] sm:$0xff]  ;;  %v149_v27 = vmax.f32 %v833_v0, %v835_v1  ;;  %vm207_vm2 = vcmask 195712   ;;  %vm214_vm3 = vcmask 261312  }
  0x10   :  { %1163 = vst [vmem:[#allocation8_spill] sm:$0xff] %v843_v5  ;;  %v845_v6 = vld [vmem:[#allocation2 + $0x98] sm:$0xff]  ;;  %v61_v7 = vadd.f32 %v841_v4, %v837_v2  ;;  %v849_v8 = vld [vmem:[#allocation2 + $0x10] sm:$0xff]  ;;  %v857_v12 = vld [vmem:[#allocation2 + $0xa0] sm:$0xff]  ;;  %v125_v25 = vmax.f32 %v837_v2, %v841_v4  ;;  %vm221_vm4 = vcmask 326912   ;;  %vm228_vm5 = vcmask 392512  }
  0x11   :  { %1164 = vst [vmem:[#allocation9_spill] sm:$0xff] %v845_v6  ;;  %v851_v9 = vld [vmem:[#allocation2 + $0x18] sm:$0xff]  ;;  %86 = vadd.xlane.f32.xlu1 %v85_v3  ;;  %v88_v10 = vadd.f32 %v845_v6, %v843_v5  ;;  %v859_v13 = vld [vmem:[#allocation2 + $0xa8] sm:$0xff]  ;;  %v861_v14 = vld [vmem:[#allocation2 + $0x20] sm:$0xff]  ;;  %v152_v26 = vmax.f32 %v843_v5, %v845_v6  ;;  %v804_v3 = vmov 0.0   ;;  %vm235_vm6 = vcmask 458112  }
  0x12   :  { %62 = vadd.xlane.f32.xlu0 %v61_v7  ;;  %v64_v11 = vadd.f32 %v851_v9, %v849_v8  ;;  %1165 = vst [vmem:[#allocation10_spill] sm:$0xff] %v859_v13  ;;  %v863_v15 = vld [vmem:[#allocation2 + $0x28] sm:$0xff]  ;;  %v91_v16 = vadd.f32 %v859_v13, %v857_v12  ;;  %v869_v18 = vld [vmem:[#allocation2 + $0xb0] sm:$0xff]  ;;  %v871_v19 = vld [vmem:[#allocation2 + $0xb8] sm:$0xff]  ;;  %v128_v24 = vmax.f32 %v849_v8, %v851_v9  ;;  %vm242_vm7 = vcmask 523712  }
  0x13   :  { %v67_v17 = vadd.f32 %v863_v15, %v861_v14  ;;  %1166 = vst [vmem:[#allocation11_spill] sm:$0xff] %v869_v18  ;;  %1167 = vst [vmem:[#allocation12_spill] sm:$0xff] %v871_v19  ;;  %v873_v20 = vld [vmem:[#allocation2 + $0x30] sm:$0xff]  ;;  %v875_v21 = vld [vmem:[#allocation2 + $0x38] sm:$0xff]  ;;  %v94_v22 = vadd.f32 %v871_v19, %v869_v18  ;;  %v155_v34 = vmax.f32 %v857_v12, %v859_v13  ;;  %723 = vmatprep.subr.mxu0 %v804_v3  ;;  %vm283_vm8 = vcmask 1041409  }
  0x14   :  { %v70_v23 = vadd.f32 %v875_v21, %v873_v20  ;;  %v889_v28 = vld [vmem:[#allocation2 + $0xc0] sm:$0xff]  ;;  %v891_v29 = vld [vmem:[#allocation2 + $0xc8] sm:$0xff]  ;;  %v131_v35 = vmax.f32 %v861_v14, %v863_v15  ;;  %v905_v36 = vld [vmem:[#allocation2 + $0xd0] sm:$0xff]  ;;  %v158_v42 = vmax.f32 %v869_v18, %v871_v19  ;;  %v134_v43 = vmax.f32 %v873_v20, %v875_v21  ;;  %742 = vmatprep.subr.mxu1 %v804_v3 }
  0x15   :  { %89 = vadd.xlane.f32.xlu1 %v88_v10  ;;  %1168 = vst [vmem:[#allocation13_spill] sm:$0xff] %v889_v28  ;;  %1169 = vst [vmem:[#allocation14_spill] sm:$0xff] %v891_v29  ;;  %v893_v30 = vld [vmem:[#allocation2 + $0x40] sm:$0xff]  ;;  %v895_v31 = vld [vmem:[#allocation2 + $0x48] sm:$0xff]  ;;  %v97_v32 = vadd.f32 %v891_v29, %v889_v28  ;;  %v161_v50 = vmax.f32 %v889_v28, %v891_v29  ;;  %739 = vmatprep.mubr.msk.f32.mxu0 %vm805_vm0, %v804_v3  ;;  %vm380_vm9 = vcmask 1043459   ;;  %vm383_vm10 = vcmask 1041408  }
  0x16   :  { %65 = vadd.xlane.f32.xlu0 %v64_v11  ;;  %v73_v33 = vadd.f32 %v895_v31, %v893_v30  ;;  %1170 = vst [vmem:[#allocation15_spill] sm:$0xff] %v905_v36  ;;  %v907_v37 = vld [vmem:[#allocation2 + $0xd8] sm:$0xff]  ;;  %v909_v38 = vld [vmem:[#allocation2 + $0x50] sm:$0xff]  ;;  %v921_v44 = vld [vmem:[#allocation2 + $0xe0] sm:$0xff]  ;;  %v137_v51 = vmax.f32 %v893_v30, %v895_v31  ;;  %744 = vmatprep.mubr.msk.f32.mxu1 %vm805_vm0, %v804_v3  ;;  %vm393_vm11 = vcmask 523264   ;;  %vm473_vm12 = vcmask 1043456  }
  0x17   :  { %1171 = vst [vmem:[#allocation16_spill] sm:$0xff] %v907_v37  ;;  %v911_v39 = vld [vmem:[#allocation2 + $0x58] sm:$0xff]  ;;  %v100_v40 = vadd.f32 %v907_v37, %v905_v36  ;;  %1172 = vst [vmem:[#allocation17_spill] sm:$0xff] %v921_v44  ;;  %v923_v45 = vld [vmem:[#allocation2 + $0xe8] sm:$0xff]  ;;  %v164_v58 = vmax.f32 %v905_v36, %v907_v37  ;;  %vm469_vm13 = vcmask 31744  }
  0x18   :  { %v76_v41 = vadd.f32 %v911_v39, %v909_v38  ;;  %1173 = vst [vmem:[#allocation18_spill] sm:$0xff] %v923_v45  ;;  %v925_v46 = vld [vmem:[#allocation2 + $0x60] sm:$0xff]  ;;  %v927_v47 = vld [vmem:[#allocation2 + $0x68] sm:$0xff]  ;;  %v103_v48 = vadd.f32 %v923_v45, %v921_v44  ;;  %v937_v52 = vld [vmem:[#allocation2 + $0xf0] sm:$0xff]  ;;  %v140_v59 = vmax.f32 %v909_v38, %v911_v39  ;;  %v167_v60 = vmax.f32 %v921_v44, %v923_v45 }
  0x19   :  { %92 = vadd.xlane.f32.xlu1 %v91_v16  ;;  %v79_v49 = vadd.f32 %v927_v47, %v925_v46  ;;  %1174 = vst [vmem:[#allocation19_spill] sm:$0xff] %v937_v52  ;;  %v939_v53 = vld [vmem:[#allocation2 + $0xf8] sm:$0xff]  ;;  %v941_v54 = vld [vmem:[#allocation2 + $0x70] sm:$0xff]  ;;  %v143_v61 = vmax.f32 %v925_v46, %v927_v47  ;;  %v390_v11 = vld [vmem:[%s1147_s1 + $0x28] sm:$0xff] }
  0x1a   :  { %68 = vadd.xlane.f32.xlu0 %v67_v17  ;;  %1175 = vst [vmem:[#allocation20_spill] sm:$0xff] %v939_v53  ;;  %v943_v55 = vld [vmem:[#allocation2 + $0x78] sm:$0xff]  ;;  %v106_v56 = vadd.f32 %v939_v53, %v937_v52  ;;  %v170_v62 = vmax.f32 %v937_v52, %v939_v53  ;;  %v391_v10 = vld [vmem:[%s1147_s1 + $0x30] sm:$0xff]  ;;  %v389_v16 = vld [vmem:[%s1147_s1 + $0x20] sm:$0xff] }
  0x1b   :  { %v82_v57 = vadd.f32 %v943_v55, %v941_v54  ;;  %v146_v63 = vmax.f32 %v941_v54, %v943_v55  ;;  %v392_v7 = vld [vmem:[%s1147_s1 + $0x38] sm:$0xff] }
  0x1c   :  { %724 = vmatpush3.msra.mxu0 %v392_v7  ;;  %v388_v17 = vld [vmem:[%s1147_s1 + $0x18] sm:$0xff] }
  0x1d   :  { %95 = vadd.xlane.f32.xlu1 %v94_v22  ;;  %725 = vmatprep.subr.mxu0 %v804_v3  ;;  %v387_v22 = vld [vmem:[%s1147_s1 + $0x10] sm:$0xff] }
  0x1e   :  { %71 = vadd.xlane.f32.xlu0 %v70_v23  ;;  %726 = vmatpush3.msra.mxu0 %v391_v10  ;;  %v386_v23 = vld [vmem:[%s1147_s1 + $0x8] sm:$0xff] }
  0x1f   :  { %727 = vmatprep.subr.mxu0 %v804_v3 }
  0x20   :  { %728 = vmatpush3.msra.mxu0 %v390_v11 }
  0x21   :  { %129 = vmax.xlane.f32.xlu1 %v128_v24  ;;  %729 = vmatprep.subr.mxu0 %v804_v3  ;;  %v385_v24 = vld [vmem:[%s1147_s1] sm:$0xff] }
  0x22   :  { %126 = vmax.xlane.f32.xlu0 %v125_v25  ;;  %730 = vmatpush3.msra.mxu0 %v389_v16 }
  0x23   :  { %731 = vmatprep.subr.mxu0 %v804_v3 }
  0x24   :  { %732 = vmatpush3.msra.mxu0 %v388_v17 }
  0x25   :  { %153 = vmax.xlane.f32.xlu1 %v152_v26  ;;  %733 = vmatprep.subr.mxu0 %v804_v3 }
  0x26   :  { %150 = vmax.xlane.f32.xlu0 %v149_v27  ;;  %734 = vmatpush3.msra.mxu0 %v387_v22 }
  0x27   :  { %735 = vmatprep.subr.mxu0 %v804_v3 }
  0x28   :  { %736 = vmatpush3.msra.mxu0 %v386_v23 }
  0x29   :  { %98 = vadd.xlane.f32.xlu1 %v97_v32  ;;  %737 = vmatprep.subr.mxu0 %v804_v3 }
  0x2a   :  { %74 = vadd.xlane.f32.xlu0 %v73_v33  ;;  %738 = vmatpush3.msra.mxu0 %v385_v24 }
  0x2d   :  { %156 = vmax.xlane.f32.xlu1 %v155_v34 }
  0x2e   :  { %132 = vmax.xlane.f32.xlu0 %v131_v35 }
  0x31   :  { %101 = vadd.xlane.f32.xlu1 %v100_v40 }
  0x32   :  { %77 = vadd.xlane.f32.xlu0 %v76_v41 }
  0x35   :  { %159 = vmax.xlane.f32.xlu1 %v158_v42 }
  0x36   :  { %135 = vmax.xlane.f32.xlu0 %v134_v43 }
  0x39   :  { %104 = vadd.xlane.f32.xlu1 %v103_v48 }
  0x3a   :  { %80 = vadd.xlane.f32.xlu0 %v79_v49 }
  0x3d   :  { %162 = vmax.xlane.f32.xlu1 %v161_v50 }
  0x3e   :  { %138 = vmax.xlane.f32.xlu0 %v137_v51 }
  0x41   :  { %107 = vadd.xlane.f32.xlu1 %v106_v56 }
  0x42   :  { %83 = vadd.xlane.f32.xlu0 %v82_v57  ;;  %v189_v57 = vlaneseq }
  0x45   :  { %165 = vmax.xlane.f32.xlu1 %v164_v58 }
  0x46   :  { %141 = vmax.xlane.f32.xlu0 %v140_v59 }
  0x49   :  { %168 = vmax.xlane.f32.xlu1 %v167_v60  ;;  %v190_v60 = vand.u32 127, %v189_v57 }
  0x4a   :  { %144 = vmax.xlane.f32.xlu0 %v143_v61  ;;  %v997_v61 = vshrl.u32 %v189_v57, 7 }
  0x4b   :  { %v202_v3 = vadd.s32 4294967280, %v190_v60  ;;  %v209_v10 = vadd.s32 4294967272, %v190_v60  ;;  %v216_v53 = vadd.s32 4294967264, %v190_v60  ;;  %v223_v52 = vadd.s32 4294967256, %v190_v60 }
  0x4c   :  { %v1004_v11 = vsub.s32 %v190_v60, %v997_v61  ;;  %v230_v44 = vadd.s32 4294967248, %v190_v60 }
  0x4d   :  { %171 = vmax.xlane.f32.xlu1 %v170_v62  ;;  %v1010_v23 = vsub.s32 %v202_v3, %v997_v61  ;;  %v1013_v45 = vsub.s32 %v209_v10, %v997_v61 }
  0x4e   :  { %147 = vmax.xlane.f32.xlu0 %v146_v63  ;;  %v195_v63 = vadd.s32 4294967288, %v190_v60 }
  0x50   :  { %v1007_v17 = vsub.s32 %v195_v63, %v997_v61 }
  0x9a   :  { %v87_v25 = vpop.xlane.xlu1 %86 }
  0x9b   :  { %v63_v26 = vpop.xlane.xlu0 %62  ;;  %v117_v37 = vmul.f32 0.00390625, %v87_v25 }
  0x9c   :  { %v109_v19 = vmul.f32 0.00390625, %v63_v26  ;;  %v1025_v26 = vsub.s32 %v223_v52, %v997_v61 }
  0x9e   :  { %v90_v27 = vpop.xlane.xlu1 %89 }
  0x9f   :  { %v66_v32 = vpop.xlane.xlu0 %65  ;;  %v118_v22 = vmul.f32 0.00390625, %v90_v27  ;;  %v237_v27 = vadd.s32 4294967240, %v190_v60 }
  0xa0   :  { %v110_v57 = vmul.f32 0.00390625, %v66_v32 }
  0xa1   :  { %v251_v3 = vrot.slane %v118_v22, %v1007_v17  ;;  %v1030_v22 = vsub.s32 %v230_v44, %v997_v61 }
  0xa2   :  { %v93_v33 = vpop.xlane.xlu1 %92  ;;  %v199_v25 = vrot.slane %v110_v57, %v1007_v17 }
  0xa3   :  { %v69_v34 = vpop.xlane.xlu0 %68  ;;  %v119_v36 = vmul.f32 0.00390625, %v93_v33  ;;  %v1022_v33 = vsub.s32 %v216_v53, %v997_v61  ;;  %v1036_v53 = vsub.s32 %v237_v27, %v997_v61 }
  0xa4   :  { %v111_v18 = vmul.f32 0.00390625, %v69_v34  ;;  %v247_v34 = vrot.slane %v117_v37, %v1004_v11 }
  0xa6   :  { %v96_v35 = vpop.xlane.xlu1 %95  ;;  %v206_v6 = vrot.slane %v111_v18, %v1010_v23 }
  0xa7   :  { %v72_v40 = vpop.xlane.xlu0 %71  ;;  %v120_v63 = vmul.f32 0.00390625, %v96_v35  ;;  %v256_v35 = vrot.slane %v119_v36, %v1010_v23 }
  0xa8   :  { %v112_v28 = vmul.f32 0.00390625, %v72_v40  ;;  %v194_v40 = vrot.slane %v109_v19, %v1004_v11 }
  0xa9   :  { %v261_v57 = vrot.slane %v120_v63, %v1013_v45 }
  0xaa   :  { %v985_v41 = vpop.xlane.xlu1 %129  ;;  %v213_v37 = vrot.slane %v112_v28, %v1013_v45  ;;  %v201_v18 = vsel %vm200_vm1, %v199_v25, %v194_v40 }
  0xab   :  { %v987_v42 = vpop.xlane.xlu0 %126  ;;  %v309_v36 = vrot.slane %v985_v41, %v1007_v17 }
  0xac   :  { %v305_v44 = vrot.slane %v987_v42, %v1004_v11  ;;  %v208_v42 = vsel %vm207_vm2, %v206_v6, %v201_v18 }
  0xae   :  { %v989_v43 = vpop.xlane.xlu1 %153 }
  0xaf   :  { %v991_v48 = vpop.xlane.xlu0 %150 }
  0xb0   :  { %v344_v63 = vrot.slane %v991_v48, %v1004_v11  ;;  %v310_v48 = vsel %vm200_vm1, %v309_v36, %v305_v44 }
  0xb2   :  { %v99_v49 = vpop.xlane.xlu1 %98 }
  0xb3   :  { %v75_v50 = vpop.xlane.xlu0 %74  ;;  %v121_v10 = vmul.f32 0.00390625, %v99_v49  ;;  %v252_v49 = vsel %vm200_vm1, %v251_v3, %v247_v34 }
  0xb4   :  { %v113_v60 = vmul.f32 0.00390625, %v75_v50  ;;  %v348_v50 = vrot.slane %v989_v43, %v1007_v17  ;;  %v257_v28 = vsel %vm207_vm2, %v256_v35, %v252_v49  ;;  %v215_v43 = vsel %vm214_vm3, %v213_v37, %v208_v42 }
  0xb5   :  { %v266_v27 = vrot.slane %v121_v10, %v1022_v33  ;;  %v262_v5 = vsel %vm214_vm3, %v261_v57, %v257_v28 }
  0xb6   :  { %v993_v51 = vpop.xlane.xlu1 %156  ;;  %v220_v41 = vrot.slane %v113_v60, %v1022_v33  ;;  %v349_v35 = vsel %vm200_vm1, %v348_v50, %v344_v63 }
  0xb7   :  { %v995_v56 = vpop.xlane.xlu0 %132  ;;  %v353_v11 = vrot.slane %v993_v51, %v1010_v23 }
  0xb8   :  { %v314_v6 = vrot.slane %v995_v56, %v1010_v23 }
  0xb9   :  { %v354_v49 = vsel %vm207_vm2, %v353_v11, %v349_v35 }
  0xba   :  { %v102_v58 = vpop.xlane.xlu1 %101 }
  0xbb   :  { %v78_v59 = vpop.xlane.xlu0 %77  ;;  %v122_v3 = vmul.f32 0.00390625, %v102_v58  ;;  %v267_v58 = vsel %vm221_vm4, %v266_v27, %v262_v5 }
  0xbc   :  { %v114_v34 = vmul.f32 0.00390625, %v78_v59 }
  0xbe   :  { %v999_v62 = vpop.xlane.xlu1 %159  ;;  %v227_v60 = vrot.slane %v114_v34, %v1025_v26 }
  0xbf   :  { %v1001_v7 = vpop.xlane.xlu0 %135  ;;  %v358_v51 = vrot.slane %v999_v62, %v1013_v45 }
  0xc0   :  { %v319_v57 = vrot.slane %v1001_v7, %v1013_v45  ;;  %v315_v45 = vsel %vm207_vm2, %v314_v6, %v310_v48 }
  0xc1   :  { %v359_v63 = vsel %vm214_vm3, %v358_v51, %v354_v49  ;;  %v559_v49 = vsub.s32 0, %v997_v61 }
  0xc2   :  { %v105_v16 = vpop.xlane.xlu1 %104 }
  0xc3   :  { %v81_v24 = vpop.xlane.xlu0 %80  ;;  %v123_v25 = vmul.f32 0.00390625, %v105_v16  ;;  %v222_v16 = vsel %vm221_vm4, %v220_v41, %v215_v43 }
  0xc4   :  { %v115_v40 = vmul.f32 0.00390625, %v81_v24  ;;  %v271_v24 = vrot.slane %v122_v3, %v1025_v26  ;;  %v229_v50 = vsel %vm228_vm5, %v227_v60, %v222_v16 }
  0xc5   :  { %v276_v5 = vrot.slane %v123_v25, %v1030_v22 }
  0xc6   :  { %v1015_v29 = vpop.xlane.xlu1 %162 }
  0xc7   :  { %v1018_v32 = vpop.xlane.xlu0 %138  ;;  %v363_v56 = vrot.slane %v1015_v29, %v1022_v33  ;;  %v272_v29 = vsel %vm228_vm5, %v271_v24, %v267_v58 }
  0xc8   :  { %v324_v37 = vrot.slane %v1018_v32, %v1022_v33  ;;  %v320_v33 = vsel %vm214_vm3, %v319_v57, %v315_v45 }
  0xc9   :  { %v364_v28 = vsel %vm221_vm4, %v363_v56, %v359_v63 }
  0xca   :  { %v108_v52 = vpop.xlane.xlu1 %107 }
  0xcb   :  { %v84_v19 = vpop.xlane.xlu0 %83  ;;  %v124_v17 = vmul.f32 0.00390625, %v108_v52  ;;  %v234_v52 = vrot.slane %v115_v40, %v1030_v22 }
  0xcc   :  { %v116_v59 = vmul.f32 0.00390625, %v84_v19 }
  0xcd   :  { %v281_v36 = vrot.slane %v124_v17, %v1036_v53  ;;  %v236_v27 = vsel %vm235_vm6, %v234_v52, %v229_v50 }
  0xce   :  { %v166_v13 = vpop.xlane.xlu1 %165  ;;  %v241_v7 = vrot.slane %v116_v59, %v1036_v53  ;;  %v468_v59 = vld [vmem:[%s1148_s2] sm:$0xf]  ;;  %s806_s2 = smov [#allocation5]  }
  0xcf   :  { %v142_v10 = vpop.xlane.xlu0 %141  ;;  %v368_v62 = vrot.slane %v166_v13, %v1025_v26  ;;  %v277_v13 = vsel %vm235_vm6, %v276_v5, %v272_v29  ;;  %743 = vmatpush3.msk.msra.mxu1 %vm473_vm12, %v468_v59  ;;  %s696_s8 = sshll.u32 %s806_s2, 4  ;;  %s697_s8 = int_to_ptr.vmem [resolvable:$true] %s696_s8 }
  0xd0   :  { %v329_v19 = vrot.slane %v142_v10, %v1025_v26  ;;  %v325_v26 = vsel %vm221_vm4, %v324_v37, %v320_v33  ;;  %v282_v3 = vsel %vm242_vm7, %v281_v36, %v277_v13  ;;  %s777_s9 = scalar_lea.vmem %s697_s8, 4096  ;;  %p782_p6 = scmp.lt.s32.totalorder %s697_s8, %s697_s8 }
  0xd1   :  { %v369_v34 = vsel %vm228_vm5, %v368_v62, %v364_v28  ;;  %v594_v62 = vsub.s32 1, %v997_v61  ;;  %p778_p5 = scmp.ne.s32.totalorder %s697_s8, %s777_s9  ;;  %p783_p7 = scmp.lt.s32.totalorder %s777_s9, %s777_s9 }
  0xd2   :  { %v169_v23 = vpop.xlane.xlu1 %168  ;;  %v330_v40 = vsel %vm228_vm5, %v329_v19, %v325_v26 }
  0xd3   :  { %v145_v44 = vpop.xlane.xlu0 %144  ;;  %v373_v18 = vrot.slane %v169_v23, %v1030_v22  ;;  %p784_p8 = por %p783_p7, %p782_p6 }
  0xd4   :  { %v334_v32 = vrot.slane %v145_v44, %v1030_v22  ;;  %v243_v22 = vsel %vm242_vm7, %v241_v7, %v236_v27 }
  0xd5   :  { %v374_v43 = vsel %vm235_vm6, %v373_v18, %v369_v34  ;;  %v284_v35 = vsel %vm283_vm8, %v282_v3, %v243_v22  ;;  %v1178_v22 = vld [vmem:[#allocation9_spill] sm:$0xff]  ;;  %p785_p9 = pnand %p784_p8, %p778_p5 }
  0xd6   :  { %v172_v41 = vpop.xlane.xlu1 %171  ;;  %v335_v11 = vsel %vm235_vm6, %v334_v32, %v330_v40 }
  0xd7   :  { %v378_v42 = vrot.slane %v172_v41, %v1036_v53  ;;  %v148_v25 = vpop.xlane.xlu0 %147 }
  0xd8   :  { %v339_v48 = vrot.slane %v148_v25, %v1036_v53 }
  0xd9   :  { %v379_v17 = vsel %vm242_vm7, %v378_v42, %v374_v43  ;;  %v1176_v42 = vld [vmem:[#allocation10_spill] sm:$0xff]  ;;  %v1179_v43 = vld [vmem:[#allocation13_spill] sm:$0xff] }
  0xda   :  { %v340_v10 = vsel %vm242_vm7, %v339_v48, %v335_v11  ;;  %v1180_v11 = vld [vmem:[#allocation14_spill] sm:$0xff] }
  0xdb   :  { %v381_v58 = vsel %vm380_vm9, %v379_v17, %v340_v10  ;;  %v1181_v17 = vld [vmem:[#allocation11_spill] sm:$0xff] }
  0xdc   :  { %v384_v6 = vsel %vm383_vm10, %v284_v35, %v381_v58  ;;  %v1182_v35 = vld [vmem:[#allocation12_spill] sm:$0xff] }
  0xdd   :  { %740 = vmatmul.mubr.msk.f32.vlgmr.msra.gmra.mxu0 %vm393_vm11, %v384_v6  ;;  %v1183_v6 = vld [vmem:[#allocation17_spill] sm:$0xff] }
 0x19d   :  { %v463_v53 = vpop.f32.mrf.mxu0 }
 0x19e   :  { %v467_v16 = vmax.f32 %v463_v53, 0.0  ;;  %v1184_v53 = vld [vmem:[#allocation18_spill] sm:$0xff] }
 0x19f   :  { %v741_v24 = vpop.f32.mrf.mxu0 }
 0x1a0   :  { %745 = vmatmul.mubr.msk.f32.vlgmr.msra.gmra.mxu1 %vm469_vm13, %v467_v16 }
 0x260   :  { %v543_v60 = vpop.f32.mrf.mxu1 }
 0x261   :  { %v548_v51 = vrot.slane %v543_v60, 2 }
 0x262   :  { %v746_v57 = vpop.f32.mrf.mxu1 }
 0x263   :  { %v550_v5 = vadd.f32 %v548_v51, %v543_v60  ;;  %v1185_v60 = vld [vmem:[#allocation15_spill] sm:$0xff]  ;;  %v1186_v57 = vld [vmem:[#allocation16_spill] sm:$0xff] }
 0x265   :  { %v711_v52 = vmul.f32 -1.442695, %v550_v5 }
 0x267   :  { %753 = vpow2.f32 %v711_v52 }
 0x274   :  { %v754_v56 = vpop.eup %753 }
 0x275   :  { %v554_v23 = vadd.f32 1.0, %v754_v56  ;;  %v1187_v56 = vld [vmem:[#allocation19_spill] sm:$0xff] }
 0x277   :  { %755 = vrcp.f32 %v554_v23 }
 0x284   :  { %v756_v37 = vpop.eup %755 }
 0x285   :  { %v560_v36 = vrot.slane %v756_v37, %v559_v49  ;;  %v595_v44 = vrot.slane %v756_v37, %v594_v62  ;;  %v1188_v49 = vld [vmem:[#allocation20_spill] sm:$0xff] }
 0x287   :  { %566 = vbcast.lane.b32.xlu1 %v560_v36, 264  ;;  %562 = vbcast.lane.b32.xlu0 %v560_v36, 256 }
 0x28b   :  { %570 = vbcast.lane.b32.xlu1 %v560_v36, 272  ;;  %578 = vbcast.lane.b32.xlu0 %v560_v36, 288 }
 0x28f   :  { %574 = vbcast.lane.b32.xlu1 %v560_v36, 280  ;;  %586 = vbcast.lane.b32.xlu0 %v560_v36, 304 }
 0x293   :  { %582 = vbcast.lane.b32.xlu1 %v560_v36, 296  ;;  %597 = vbcast.lane.b32.xlu0 %v595_v44, 256 }
 0x297   :  { %590 = vbcast.lane.b32.xlu1 %v560_v36, 312  ;;  %605 = vbcast.lane.b32.xlu0 %v595_v44, 272 }
 0x29b   :  { %601 = vbcast.lane.b32.xlu1 %v595_v44, 264  ;;  %613 = vbcast.lane.b32.xlu0 %v595_v44, 288 }
 0x29f   :  { %609 = vbcast.lane.b32.xlu1 %v595_v44, 280  ;;  %621 = vbcast.lane.b32.xlu0 %v595_v44, 304 }
 0x2a3   :  { %617 = vbcast.lane.b32.xlu1 %v595_v44, 296 }
 0x2a7   :  { %625 = vbcast.lane.b32.xlu1 %v595_v44, 312 }
 0x2f9   :  { %v567_v45 = vpop.permute.xlu1 %566  ;;  %v563_v7 = vpop.permute.xlu0 %562 }
 0x2fa   :  { %v629_v19 = vmul.f32 %v567_v45, %v849_v8  ;;  %v630_v18 = vmul.f32 %v567_v45, %v851_v9  ;;  %v627_v61 = vmul.f32 %v563_v7, %v837_v2  ;;  %v628_v29 = vmul.f32 %v563_v7, %v841_v4 }
 0x2fc   :  { %661 = vst [vmem:[#allocation5 + $0x10] sm:$0xff] %v629_v19  ;;  %662 = vst [vmem:[#allocation5 + $0x18] sm:$0xff] %v630_v18 }
 0x2fd   :  { %659 = vst [vmem:[#allocation5] sm:$0xff] %v627_v61  ;;  %660 = vst [vmem:[#allocation5 + $0x8] sm:$0xff] %v628_v29  ;;  %v571_v50 = vpop.permute.xlu1 %570  ;;  %v579_v63 = vpop.permute.xlu0 %578 }
 0x2fe   :  { %v631_v32 = vmul.f32 %v571_v50, %v861_v14  ;;  %v632_v33 = vmul.f32 %v571_v50, %v863_v15  ;;  %v635_v13 = vmul.f32 %v579_v63, %v893_v30  ;;  %v636_v8 = vmul.f32 %v579_v63, %v895_v31 }
 0x300   :  { %663 = vst [vmem:[#allocation5 + $0x20] sm:$0xff] %v631_v32  ;;  %664 = vst [vmem:[#allocation5 + $0x28] sm:$0xff] %v632_v33 }
 0x301   :  { %667 = vst [vmem:[#allocation5 + $0x40] sm:$0xff] %v635_v13  ;;  %668 = vst [vmem:[#allocation5 + $0x48] sm:$0xff] %v636_v8  ;;  %v575_v2 = vpop.permute.xlu1 %574  ;;  %v587_v4 = vpop.permute.xlu0 %586 }
 0x302   :  { %v633_v9 = vmul.f32 %v575_v2, %v873_v20  ;;  %v634_v27 = vmul.f32 %v575_v2, %v875_v21  ;;  %v639_v28 = vmul.f32 %v587_v4, %v925_v46  ;;  %v640_v14 = vmul.f32 %v587_v4, %v927_v47 }
 0x304   :  { %665 = vst [vmem:[#allocation5 + $0x30] sm:$0xff] %v633_v9  ;;  %666 = vst [vmem:[#allocation5 + $0x38] sm:$0xff] %v634_v27 }
 0x305   :  { %671 = vst [vmem:[#allocation5 + $0x60] sm:$0xff] %v639_v28  ;;  %672 = vst [vmem:[#allocation5 + $0x68] sm:$0xff] %v640_v14  ;;  %v583_v15 = vpop.permute.xlu1 %582  ;;  %v598_v30 = vpop.permute.xlu0 %597 }
 0x306   :  { %v637_v31 = vmul.f32 %v583_v15, %v909_v38  ;;  %v638_v41 = vmul.f32 %v583_v15, %v911_v39  ;;  %v643_v26 = vmul.f32 %v598_v30, %v833_v0  ;;  %v644_v20 = vmul.f32 %v598_v30, %v835_v1  ;;  %v1177_v39 = vld [vmem:[#allocation8_spill] sm:$0xff] }
 0x308   :  { %669 = vst [vmem:[#allocation5 + $0x50] sm:$0xff] %v637_v31  ;;  %670 = vst [vmem:[#allocation5 + $0x58] sm:$0xff] %v638_v41 }
 0x309   :  { %675 = vst [vmem:[#allocation5 + $0x80] sm:$0xff] %v643_v26  ;;  %676 = vst [vmem:[#allocation5 + $0x88] sm:$0xff] %v644_v20  ;;  %v591_v21 = vpop.permute.xlu1 %590  ;;  %v606_v46 = vpop.permute.xlu0 %605 }
 0x30a   :  { %v641_v47 = vmul.f32 %v591_v21, %v941_v54  ;;  %v642_v3 = vmul.f32 %v591_v21, %v943_v55  ;;  %v647_v34 = vmul.f32 %v606_v46, %v857_v12  ;;  %v648_v38 = vmul.f32 %v606_v46, %v1176_v42 }
 0x30c   :  { %673 = vst [vmem:[#allocation5 + $0x70] sm:$0xff] %v641_v47  ;;  %674 = vst [vmem:[#allocation5 + $0x78] sm:$0xff] %v642_v3 }
 0x30d   :  { %679 = vst [vmem:[#allocation5 + $0xa0] sm:$0xff] %v647_v34  ;;  %680 = vst [vmem:[#allocation5 + $0xa8] sm:$0xff] %v648_v38  ;;  %v602_v0 = vpop.permute.xlu1 %601  ;;  %v614_v1 = vpop.permute.xlu0 %613 }
 0x30e   :  { %v645_v25 = vmul.f32 %v602_v0, %v1177_v39  ;;  %v646_v40 = vmul.f32 %v602_v0, %v1178_v22  ;;  %v651_v48 = vmul.f32 %v614_v1, %v1179_v43  ;;  %v652_v54 = vmul.f32 %v614_v1, %v1180_v11 }
 0x310   :  { %677 = vst [vmem:[#allocation5 + $0x90] sm:$0xff] %v645_v25  ;;  %678 = vst [vmem:[#allocation5 + $0x98] sm:$0xff] %v646_v40 }
 0x311   :  { %683 = vst [vmem:[#allocation5 + $0xc0] sm:$0xff] %v651_v48  ;;  %684 = vst [vmem:[#allocation5 + $0xc8] sm:$0xff] %v652_v54  ;;  %v610_v12 = vpop.permute.xlu1 %609  ;;  %v622_v55 = vpop.permute.xlu0 %621 }
 0x312   :  { %v649_v10 = vmul.f32 %v610_v12, %v1181_v17  ;;  %v650_v58 = vmul.f32 %v610_v12, %v1182_v35  ;;  %v655_v59 = vmul.f32 %v622_v55, %v1183_v6  ;;  %v656_v16 = vmul.f32 %v622_v55, %v1184_v53 }
 0x314   :  { %681 = vst [vmem:[#allocation5 + $0xb0] sm:$0xff] %v649_v10  ;;  %682 = vst [vmem:[#allocation5 + $0xb8] sm:$0xff] %v650_v58 }
 0x315   :  { %687 = vst [vmem:[#allocation5 + $0xe0] sm:$0xff] %v655_v59  ;;  %688 = vst [vmem:[#allocation5 + $0xe8] sm:$0xff] %v656_v16  ;;  %v618_v24 = vpop.permute.xlu1 %617 }
 0x316   :  { %v653_v51 = vmul.f32 %v618_v24, %v1185_v60  ;;  %v654_v5 = vmul.f32 %v618_v24, %v1186_v57 }
 0x318   :  { %685 = vst [vmem:[#allocation5 + $0xd0] sm:$0xff] %v653_v51  ;;  %686 = vst [vmem:[#allocation5 + $0xd8] sm:$0xff] %v654_v5 }
 0x319   :  { %v626_v52 = vpop.permute.xlu1 %625 }
 0x31a   :  { %v657_v23 = vmul.f32 %v626_v52, %v1187_v56  ;;  %v658_v37 = vmul.f32 %v626_v52, %v1188_v49 }
 0x31c   :  { %689 = vst [vmem:[#allocation5 + $0xf0] sm:$0xff] %v657_v23  ;;  %690 = vst [vmem:[#allocation5 + $0xf8] sm:$0xff] %v658_v37 }
 0x31d   :  { %788 = shalt.err (!%p785_p9)
}
 0x31e   :  { %702 = dma.vmem_to_hbm [thread:$0]  %s697_s8, 4096, %s1149_s3, [#allocation4], %s802_s15, %s802_s15, %s803_s16  }
 0x31f   :  { %799 = dma.done.wait [#allocation4], 4096  }
 0x320   :  { %800 = vsyncadd [#allocation4], 4294963200 }
 0x321   :  { %706 = vsyncpa [#allocation3], 1 }
 0x322   :  { %707 = vsyncpa [#allocation4], 1 }

</bundles_post_ra>
